<compile_context>
chip_gen: v7x
topology: tpu7x:2x2x1
jax: 0.10.0
libtpu: 0.0.40
codegen_flags: <defaults>
</compile_context>

<pallas_src>
import jax
import jax.numpy as jnp
from jax.experimental import pallas as pl
from jax.experimental.pallas import tpu as pltpu


def _round_up(a, m):
    return (a + m - 1) // m * m


def _cgif_kernel(x_ref, y_ref, a1_ref, a2_ref,
                 w1a_ref, b1a_ref, w1b_ref, b1b_ref,
                 w2a_ref, b2a_ref, w2b_ref, b2b_ref,
                 out_ref):
    # x_ref / y_ref: (TM, D) row tiles; a*_ref: (TM, 1) per-row PReLU alphas;
    # weights are pre-transposed to (in, out); biases are (1, D).
    x = x_ref[...]
    y = y_ref[...]
    D = x.shape[-1]

    # ---- filter1(x), gate y ----
    h1 = jnp.dot(x, w1a_ref[...], preferred_element_type=jnp.float32) + b1a_ref[...]
    h1 = jnp.where(h1 > 0, h1, a1_ref[...] * h1)              # PReLU, per-row alpha
    g1 = jax.nn.sigmoid(
        jnp.dot(h1, w1b_ref[...], preferred_element_type=jnp.float32) + b1b_ref[...])
    out_ref[:, :D] = (g1 * y).astype(out_ref.dtype)            # first half of concat

    # ---- filter2(y), gate x ----
    h2 = jnp.dot(y, w2a_ref[...], preferred_element_type=jnp.float32) + b2a_ref[...]
    h2 = jnp.where(h2 > 0, h2, a2_ref[...] * h2)
    g2 = jax.nn.sigmoid(
        jnp.dot(h2, w2b_ref[...], preferred_element_type=jnp.float32) + b2b_ref[...])
    out_ref[:, D:] = (g2 * x).astype(out_ref.dtype)            # second half of concat


def cross_gated_info_filter(x, y, params, *, row_tile=256):
    """x, y: (B, P, D). params: dict of weights (PyTorch layout). Returns (B, P, 2D)."""
    B, P, D = x.shape
    M = B * P

    # Flatten batch*point into the M (row) dimension.
    xf = x.reshape(M, D)
    yf = y.reshape(M, D)

    # Per-row PReLU alphas: alpha varies with the point index (row % P), broadcast over B.
    a1_rows = jnp.tile(params["a1"].reshape(1, P), (B, 1)).reshape(M, 1)
    a2_rows = jnp.tile(params["a2"].reshape(1, P), (B, 1)).reshape(M, 1)

    # Pre-transpose weights once on the host side: kernel consumes (in, out) directly.
    w1a_t = params["w1a"].T
    w1b_t = params["w1b"].T
    w2a_t = params["w2a"].T
    w2b_t = params["w2b"].T
    b1a = params["b1a"].reshape(1, D)
    b1b = params["b1b"].reshape(1, D)
    b2a = params["b2a"].reshape(1, D)
    b2b = params["b2b"].reshape(1, D)

    # Row tile: as large as possible (up to `row_tile`), multiple of 8.
    TM = min(row_tile, _round_up(M, 8))
    M_pad = _round_up(M, TM)
    if M_pad != M:
        pad = ((0, M_pad - M), (0, 0))
        xf = jnp.pad(xf, pad)
        yf = jnp.pad(yf, pad)
        a1_rows = jnp.pad(a1_rows, pad)
        a2_rows = jnp.pad(a2_rows, pad)

    grid = (M_pad // TM,)

    row_spec = pl.BlockSpec((TM, D), lambda i: (i, 0))
    alpha_spec = pl.BlockSpec((TM, 1), lambda i: (i, 0))
    w_spec = pl.BlockSpec((D, D), lambda i: (0, 0))     # grid-invariant weight tiles
    b_spec = pl.BlockSpec((1, D), lambda i: (0, 0))

    out_flat = pl.pallas_call(
        _cgif_kernel,
        out_shape=jax.ShapeDtypeStruct((M_pad, 2 * D), x.dtype),
        grid_spec=pltpu.PrefetchScalarGridSpec(
            num_scalar_prefetch=0,
            grid=grid,
            in_specs=[
                row_spec, row_spec, alpha_spec, alpha_spec,
                w_spec, b_spec, w_spec, b_spec,
                w_spec, b_spec, w_spec, b_spec,
            ],
            out_specs=pl.BlockSpec((TM, 2 * D), lambda i: (i, 0)),
        ),
        compiler_params=pltpu.CompilerParams(dimension_semantics=("parallel",)),
    )(xf, yf, a1_rows, a2_rows,
      w1a_t, b1a, w1b_t, b1b,
      w2a_t, b2a, w2b_t, b2b)

    return out_flat[:M].reshape(B, P, 2 * D)


def _reference(x, y, params):
    """Pure-JAX reference matching the PyTorch forward."""
    def filt(inp, wa, ba, alpha, wb, bb):
        h = inp @ wa.T + ba
        h = jnp.where(h > 0, h, alpha[None, :, None] * h)
        return h @ wb.T + bb

    z1 = jax.nn.sigmoid(filt(x, params["w1a"], params["b1a"], params["a1"],
                             params["w1b"], params["b1b"])) * y
    z2 = jax.nn.sigmoid(filt(y, params["w2a"], params["b2a"], params["a2"],
                             params["w2b"], params["b2b"])) * x
    return jnp.concatenate([z1, z2], axis=-1)


if __name__ == "__main__":
    B, P, D = 2, 8, 32          # batch, point (PReLU channels), in_size

    key = jax.random.PRNGKey(0)
    ks = jax.random.split(key, 12)
    scale = 1.0 / jnp.sqrt(D)

    params = {
        "w1a": jax.random.uniform(ks[0], (D, D), jnp.float32, -scale, scale),
        "b1a": jax.random.uniform(ks[1], (D,), jnp.float32, -scale, scale),
        "a1":  jnp.full((P,), 0.25, jnp.float32),   # PReLU default init
        "w1b": jax.random.uniform(ks[2], (D, D), jnp.float32, -scale, scale),
        "b1b": jax.random.uniform(ks[3], (D,), jnp.float32, -scale, scale),
        "w2a": jax.random.uniform(ks[4], (D, D), jnp.float32, -scale, scale),
        "b2a": jax.random.uniform(ks[5], (D,), jnp.float32, -scale, scale),
        "a2":  jnp.full((P,), 0.25, jnp.float32),
        "w2b": jax.random.uniform(ks[6], (D, D), jnp.float32, -scale, scale),
        "b2b": jax.random.uniform(ks[7], (D,), jnp.float32, -scale, scale),
    }

    x = jax.random.normal(ks[8], (B, P, D), jnp.float32)
    y = jax.random.normal(ks[9], (B, P, D), jnp.float32)

    out = cross_gated_info_filter(x, y, params)
    out = jax.block_until_ready(out)

    ref = _reference(x, y, params)
    assert out.shape == (B, P, 2 * D)
    assert jnp.allclose(out, ref, atol=1e-5, rtol=1e-5), "mismatch vs pure-JAX reference"

    print("KERNEL_OK")
</pallas_src>

<mosaic_0001>
module attributes {stable_mosaic.version = 11 : i64} {
  func.func @_cgif_kernel(%arg0: i32, %arg1: memref<16x32xf32, #tpu.memory_space<vmem>>, %arg2: memref<16x32xf32, #tpu.memory_space<vmem>>, %arg3: memref<16x1xf32, #tpu.memory_space<vmem>>, %arg4: memref<16x1xf32, #tpu.memory_space<vmem>>, %arg5: memref<32x32xf32, #tpu.memory_space<vmem>>, %arg6: memref<1x32xf32, #tpu.memory_space<vmem>>, %arg7: memref<32x32xf32, #tpu.memory_space<vmem>>, %arg8: memref<1x32xf32, #tpu.memory_space<vmem>>, %arg9: memref<32x32xf32, #tpu.memory_space<vmem>>, %arg10: memref<1x32xf32, #tpu.memory_space<vmem>>, %arg11: memref<32x32xf32, #tpu.memory_space<vmem>>, %arg12: memref<1x32xf32, #tpu.memory_space<vmem>>, %arg13: memref<16x64xf32, #tpu.memory_space<vmem>>) attributes {dimension_semantics = [#tpu.dimension_semantics<parallel>], iteration_bounds = array<i64: 1>, scalar_prefetch = 0 : i64, scratch_operands = 0 : i64, tpu.core_type = #tpu.core_type<tc>, window_params = [{transform_indices = @transform_0, window_bounds = array<i64: 16, 32>}, {transform_indices = @transform_1, window_bounds = array<i64: 16, 32>}, {transform_indices = @transform_2, window_bounds = array<i64: 16, 1>}, {transform_indices = @transform_3, window_bounds = array<i64: 16, 1>}, {pipeline_mode = #tpu.pipeline_mode<synchronous>, transform_indices = @transform_4, window_bounds = array<i64: 32, 32>}, {pipeline_mode = #tpu.pipeline_mode<synchronous>, transform_indices = @transform_5, window_bounds = array<i64: 1, 32>}, {pipeline_mode = #tpu.pipeline_mode<synchronous>, transform_indices = @transform_6, window_bounds = array<i64: 32, 32>}, {pipeline_mode = #tpu.pipeline_mode<synchronous>, transform_indices = @transform_7, window_bounds = array<i64: 1, 32>}, {pipeline_mode = #tpu.pipeline_mode<synchronous>, transform_indices = @transform_8, window_bounds = array<i64: 32, 32>}, {pipeline_mode = #tpu.pipeline_mode<synchronous>, transform_indices = @transform_9, window_bounds = array<i64: 1, 32>}, {pipeline_mode = #tpu.pipeline_mode<synchronous>, transform_indices = @transform_10, window_bounds = array<i64: 32, 32>}, {pipeline_mode = #tpu.pipeline_mode<synchronous>, transform_indices = @transform_11, window_bounds = array<i64: 1, 32>}, {transform_indices = @transform_12, window_bounds = array<i64: 16, 64>}]} {
    %c0 = arith.constant 0 : index
    %c0_0 = arith.constant 0 : index
    %0 = vector.load %arg1[%c0, %c0_0] : memref<16x32xf32, #tpu.memory_space<vmem>>, vector<16x32xf32>
    %c0_1 = arith.constant 0 : index
    %c0_2 = arith.constant 0 : index
    %1 = vector.load %arg2[%c0_1, %c0_2] : memref<16x32xf32, #tpu.memory_space<vmem>>, vector<16x32xf32>
    %c0_3 = arith.constant 0 : index
    %c0_4 = arith.constant 0 : index
    %2 = vector.load %arg5[%c0_3, %c0_4] : memref<32x32xf32, #tpu.memory_space<vmem>>, vector<32x32xf32>
    %cst = arith.constant dense<0.000000e+00> : vector<16x32xf32>
    %3 = tpu.matmul %0, %2, %cst {dimension_numbers = #tpu.dot_dimension_numbers<[1], [0], [0], [1], [0, 0, 1, 1], [], []>} : vector<16x32xf32>, vector<32x32xf32>, vector<16x32xf32> -> vector<16x32xf32>
    %c0_5 = arith.constant 0 : index
    %c0_6 = arith.constant 0 : index
    %4 = vector.load %arg6[%c0_5, %c0_6] : memref<1x32xf32, #tpu.memory_space<vmem>>, vector<1x32xf32>
    %5 = vector.broadcast %4 : vector<1x32xf32> to vector<16x32xf32>
    %6 = arith.addf %3, %5 : vector<16x32xf32>
    %cst_7 = arith.constant 0.000000e+00 : f32
    %7 = vector.broadcast %cst_7 : f32 to vector<16x32xf32>
    %8 = arith.cmpf ogt, %6, %7 : vector<16x32xf32>
    %c0_8 = arith.constant 0 : index
    %c0_9 = arith.constant 0 : index
    %9 = vector.load %arg3[%c0_8, %c0_9] : memref<16x1xf32, #tpu.memory_space<vmem>>, vector<16x1xf32>
    %10 = vector.broadcast %9 : vector<16x1xf32> to vector<16x32xf32>
    %11 = arith.mulf %10, %6 : vector<16x32xf32>
    %12 = arith.select %8, %6, %11 : vector<16x32xi1>, vector<16x32xf32>
    %c0_10 = arith.constant 0 : index
    %c0_11 = arith.constant 0 : index
    %13 = vector.load %arg7[%c0_10, %c0_11] : memref<32x32xf32, #tpu.memory_space<vmem>>, vector<32x32xf32>
    %cst_12 = arith.constant dense<0.000000e+00> : vector<16x32xf32>
    %14 = tpu.matmul %12, %13, %cst_12 {dimension_numbers = #tpu.dot_dimension_numbers<[1], [0], [0], [1], [0, 0, 1, 1], [], []>} : vector<16x32xf32>, vector<32x32xf32>, vector<16x32xf32> -> vector<16x32xf32>
    %c0_13 = arith.constant 0 : index
    %c0_14 = arith.constant 0 : index
    %15 = vector.load %arg8[%c0_13, %c0_14] : memref<1x32xf32, #tpu.memory_space<vmem>>, vector<1x32xf32>
    %16 = vector.broadcast %15 : vector<1x32xf32> to vector<16x32xf32>
    %17 = arith.addf %14, %16 : vector<16x32xf32>
    %18 = arith.negf %17 : vector<16x32xf32>
    %19 = math.exp %18 : vector<16x32xf32>
    %cst_15 = arith.constant 1.000000e+00 : f32
    %20 = vector.broadcast %cst_15 : f32 to vector<16x32xf32>
    %21 = arith.addf %20, %19 : vector<16x32xf32>
    %22 = arith.divf %20, %21 : vector<16x32xf32>
    %23 = arith.mulf %22, %1 : vector<16x32xf32>
    %c0_16 = arith.constant 0 : index
    %c0_17 = arith.constant 0 : index
    %24 = vector.load %arg13[%c0_16, %c0_17] : memref<16x64xf32, #tpu.memory_space<vmem>>, vector<16x32xf32>
    tpu.vector_store %arg13[%c0_16, %c0_17], %23 {strides = array<i32>} : memref<16x64xf32, #tpu.memory_space<vmem>>, vector<16x32xf32>,
    %c0_18 = arith.constant 0 : index
    %c0_19 = arith.constant 0 : index
    %25 = vector.load %arg9[%c0_18, %c0_19] : memref<32x32xf32, #tpu.memory_space<vmem>>, vector<32x32xf32>
    %cst_20 = arith.constant dense<0.000000e+00> : vector<16x32xf32>
    %26 = tpu.matmul %1, %25, %cst_20 {dimension_numbers = #tpu.dot_dimension_numbers<[1], [0], [0], [1], [0, 0, 1, 1], [], []>} : vector<16x32xf32>, vector<32x32xf32>, vector<16x32xf32> -> vector<16x32xf32>
    %c0_21 = arith.constant 0 : index
    %c0_22 = arith.constant 0 : index
    %27 = vector.load %arg10[%c0_21, %c0_22] : memref<1x32xf32, #tpu.memory_space<vmem>>, vector<1x32xf32>
    %28 = vector.broadcast %27 : vector<1x32xf32> to vector<16x32xf32>
    %29 = arith.addf %26, %28 : vector<16x32xf32>
    %cst_23 = arith.constant 0.000000e+00 : f32
    %30 = vector.broadcast %cst_23 : f32 to vector<16x32xf32>
    %31 = arith.cmpf ogt, %29, %30 : vector<16x32xf32>
    %c0_24 = arith.constant 0 : index
    %c0_25 = arith.constant 0 : index
    %32 = vector.load %arg4[%c0_24, %c0_25] : memref<16x1xf32, #tpu.memory_space<vmem>>, vector<16x1xf32>
    %33 = vector.broadcast %32 : vector<16x1xf32> to vector<16x32xf32>
    %34 = arith.mulf %33, %29 : vector<16x32xf32>
    %35 = arith.select %31, %29, %34 : vector<16x32xi1>, vector<16x32xf32>
    %c0_26 = arith.constant 0 : index
    %c0_27 = arith.constant 0 : index
    %36 = vector.load %arg11[%c0_26, %c0_27] : memref<32x32xf32, #tpu.memory_space<vmem>>, vector<32x32xf32>
    %cst_28 = arith.constant dense<0.000000e+00> : vector<16x32xf32>
    %37 = tpu.matmul %35, %36, %cst_28 {dimension_numbers = #tpu.dot_dimension_numbers<[1], [0], [0], [1], [0, 0, 1, 1], [], []>} : vector<16x32xf32>, vector<32x32xf32>, vector<16x32xf32> -> vector<16x32xf32>
    %c0_29 = arith.constant 0 : index
    %c0_30 = arith.constant 0 : index
    %38 = vector.load %arg12[%c0_29, %c0_30] : memref<1x32xf32, #tpu.memory_space<vmem>>, vector<1x32xf32>
    %39 = vector.broadcast %38 : vector<1x32xf32> to vector<16x32xf32>
    %40 = arith.addf %37, %39 : vector<16x32xf32>
    %41 = arith.negf %40 : vector<16x32xf32>
    %42 = math.exp %41 : vector<16x32xf32>
    %cst_31 = arith.constant 1.000000e+00 : f32
    %43 = vector.broadcast %cst_31 : f32 to vector<16x32xf32>
    %44 = arith.addf %43, %42 : vector<16x32xf32>
    %45 = arith.divf %43, %44 : vector<16x32xf32>
    %46 = arith.mulf %45, %0 : vector<16x32xf32>
    %c0_32 = arith.constant 0 : index
    %c32 = arith.constant 32 : index
    %47 = vector.load %arg13[%c0_32, %c32] : memref<16x64xf32, #tpu.memory_space<vmem>>, vector<16x32xf32>
    tpu.vector_store %arg13[%c0_32, %c32], %46 {strides = array<i32>} : memref<16x64xf32, #tpu.memory_space<vmem>>, vector<16x32xf32>,
    return
  }
  func.func @transform_0(%arg0: i32) -> (i32, i32) {
    %c0_i32 = arith.constant 0 : i32
    %c0_i32_0 = arith.constant 0 : i32
    return %arg0, %c0_i32 : i32, i32
  }
  func.func @transform_1(%arg0: i32) -> (i32, i32) {
    %c0_i32 = arith.constant 0 : i32
    %c0_i32_0 = arith.constant 0 : i32
    return %arg0, %c0_i32 : i32, i32
  }
  func.func @transform_2(%arg0: i32) -> (i32, i32) {
    %c0_i32 = arith.constant 0 : i32
    %c0_i32_0 = arith.constant 0 : i32
    return %arg0, %c0_i32 : i32, i32
  }
  func.func @transform_3(%arg0: i32) -> (i32, i32) {
    %c0_i32 = arith.constant 0 : i32
    %c0_i32_0 = arith.constant 0 : i32
    return %arg0, %c0_i32 : i32, i32
  }
  func.func @transform_4(%arg0: i32) -> (i32, i32) {
    %c0_i32 = arith.constant 0 : i32
    %c0_i32_0 = arith.constant 0 : i32
    %c0_i32_1 = arith.constant 0 : i32
    return %c0_i32, %c0_i32_0 : i32, i32
  }
  func.func @transform_5(%arg0: i32) -> (i32, i32) {
    %c0_i32 = arith.constant 0 : i32
    %c0_i32_0 = arith.constant 0 : i32
    %c0_i32_1 = arith.constant 0 : i32
    return %c0_i32, %c0_i32_0 : i32, i32
  }
  func.func @transform_6(%arg0: i32) -> (i32, i32) {
    %c0_i32 = arith.constant 0 : i32
    %c0_i32_0 = arith.constant 0 : i32
    %c0_i32_1 = arith.constant 0 : i32
    return %c0_i32, %c0_i32_0 : i32, i32
  }
  func.func @transform_7(%arg0: i32) -> (i32, i32) {
    %c0_i32 = arith.constant 0 : i32
    %c0_i32_0 = arith.constant 0 : i32
    %c0_i32_1 = arith.constant 0 : i32
    return %c0_i32, %c0_i32_0 : i32, i32
  }
  func.func @transform_8(%arg0: i32) -> (i32, i32) {
    %c0_i32 = arith.constant 0 : i32
    %c0_i32_0 = arith.constant 0 : i32
    %c0_i32_1 = arith.constant 0 : i32
    return %c0_i32, %c0_i32_0 : i32, i32
  }
  func.func @transform_9(%arg0: i32) -> (i32, i32) {
    %c0_i32 = arith.constant 0 : i32
    %c0_i32_0 = arith.constant 0 : i32
    %c0_i32_1 = arith.constant 0 : i32
    return %c0_i32, %c0_i32_0 : i32, i32
  }
  func.func @transform_10(%arg0: i32) -> (i32, i32) {
    %c0_i32 = arith.constant 0 : i32
    %c0_i32_0 = arith.constant 0 : i32
    %c0_i32_1 = arith.constant 0 : i32
    return %c0_i32, %c0_i32_0 : i32, i32
  }
  func.func @transform_11(%arg0: i32) -> (i32, i32) {
    %c0_i32 = arith.constant 0 : i32
    %c0_i32_0 = arith.constant 0 : i32
    %c0_i32_1 = arith.constant 0 : i32
    return %c0_i32, %c0_i32_0 : i32, i32
  }
  func.func @transform_12(%arg0: i32) -> (i32, i32) {
    %c0_i32 = arith.constant 0 : i32
    %c0_i32_0 = arith.constant 0 : i32
    return %arg0, %c0_i32 : i32, i32
  }
}

</mosaic_0001>

<bundles_post_ra>
// kernel: tpu_custom_call.1
= control target key start
LH: loop header
LB: loop body
LE: loop exit
PB: predicated region body
PF: predicated region fallthrough
CT: control target
= control target key end

     0   :  { %17 = vsyncpa [#allocation3], 0  ;;  %s1156_s0 = inlined_call_operand.hbm [shape: f32[16,32], index: 0, kind: input, shape index: {}]   ;;  %s1157_s1 = inlined_call_operand.hbm [shape: f32[16,32], index: 1, kind: input, shape index: {}]   ;;  %s1158_s2 = inlined_call_operand.vmem [shape: f32[16,1], index: 2, kind: input, shape index: {}]   ;;  %s1159_s3 = inlined_call_operand.vmem [shape: f32[16,1], index: 3, kind: input, shape index: {}]   ;;  %s1160_s4 = inlined_call_operand.vmem [shape: f32[32,32], index: 4, kind: input, shape index: {}]   ;;  %s1161_s5 = inlined_call_operand.hbm [shape: f32[1,32], index: 5, kind: input, shape index: {}]   ;;  %s1162_s6 = inlined_call_operand.hbm [shape: f32[32,32], index: 6, kind: input, shape index: {}]   ;;  %s1163_s7 = inlined_call_operand.hbm [shape: f32[1,32], index: 7, kind: input, shape index: {}]   ;;  %s1164_s8 = inlined_call_operand.vmem [shape: f32[32,32], index: 8, kind: input, shape index: {}]   ;;  %s1165_s9 = inlined_call_operand.vmem [shape: f32[1,32], index: 9, kind: input, shape index: {}]   ;;  %s1166_s10 = inlined_call_operand.hbm [shape: f32[32,32], index: 10, kind: input, shape index: {}]   ;;  %s1167_s11 = inlined_call_operand.vmem [shape: f32[1,32], index: 11, kind: input, shape index: {}]   ;;  %s1168_s12 = inlined_call_operand.hbm [shape: f32[16,64], index: 12, kind: output, shape index: {}]  }
   0x1   :  { %18 = vsyncpa [#allocation6], 0 }
   0x2   :  { %19 = vsyncpa [#allocation9], 0 }
   0x3   :  { %20 = vsyncpa [#allocation12], 0 }
   0x4   :  { %21 = vsyncpa [#allocation4], 0  ;;  %s899_s21 = smov [#allocation5]   ;;  %s900_s23 = smov [#allocation8]  }
   0x5   :  { %s39_s22 = sshll.u32 %s899_s21, 4  ;;  %s67_s24 = sshll.u32 %s900_s23, 4  ;;  %s40_s22 = int_to_ptr.vmem [resolvable:$true] %s39_s22  ;;  %s975_s24 = int_to_ptr.vmem [resolvable:$true] %s67_s24 }
   0x6   :  { %s735_s27 = scalar_lea.hbm %s1157_s1, 256 }
   0x7   :  { %p736_p0 = scmp.ne.s32.totalorder %s1157_s1, %s735_s27  ;;  %p739_p1 = scmp.lt.u32.totalorder %s735_s27, %s1157_s1 }
   0x9   :  { %p741_p2 = pnand %p739_p1, %p736_p0 }
   0xb   :  { %744 = shalt.err (!%p741_p2)
}
   0xc   :  { %s745_s14 = scalar_lea.vmem %s40_s22, 256  ;;  %p750_p4 = scmp.lt.s32.totalorder %s40_s22, %s40_s22 }
   0xd   :  { %p746_p3 = scmp.ne.s32.totalorder %s40_s22, %s745_s14  ;;  %p751_p5 = scmp.lt.s32.totalorder %s745_s14, %s745_s14 }
   0xf   :  { %p752_p6 = por %p751_p5, %p750_p4 }
  0x11   :  { %p753_p7 = pnand %p752_p6, %p746_p3 }
  0x13   :  { %756 = shalt.err (!%p753_p7)
}
  0x14   :  { %s901_s15 = smov 128   ;;  %s902_s16 = smov 8  }
  0x15   :  { %45 = dma.hbm_to_vmem [thread:$0]  %s1157_s1, 256, %s40_s22, [#allocation6], %s901_s15, %s901_s15, %s902_s16  }
  0x16   :  { %s757_s21 = scalar_lea.hbm %s1162_s6, 512 }
  0x17   :  { %p758_p8 = scmp.ne.s32.totalorder %s1162_s6, %s757_s21  ;;  %p761_p9 = scmp.lt.u32.totalorder %s757_s21, %s1162_s6 }
  0x19   :  { %p763_p10 = pnand %p761_p9, %p758_p8 }
  0x1b   :  { %766 = shalt.err (!%p763_p10)
}
  0x1c   :  { %s767_s28 = scalar_lea.vmem %s975_s24, 512  ;;  %p772_p12 = scmp.lt.s32.totalorder %s975_s24, %s975_s24 }
  0x1d   :  { %p768_p11 = scmp.ne.s32.totalorder %s975_s24, %s767_s28  ;;  %p773_p13 = scmp.lt.s32.totalorder %s767_s28, %s767_s28 }
  0x1f   :  { %p774_p0 = por %p773_p13, %p772_p12 }
  0x21   :  { %p775_p1 = pnand %p774_p0, %p768_p11 }
  0x23   :  { %778 = shalt.err (!%p775_p1)
}
  0x24   :  { %73 = dma.hbm_to_vmem [thread:$0]  %s1162_s6, 512, %s975_s24, [#allocation9], %s901_s15, %s901_s15, %s902_s16  }
  0x25   :  { %s903_s29 = smov [#allocation2]   ;;  %s904_s13 = smov [#allocation7]  }
  0x26   :  { %s27_s30 = sshll.u32 %s903_s29, 4  ;;  %s58_s14 = sshll.u32 %s904_s13, 4  ;;  %s28_s30 = int_to_ptr.vmem [resolvable:$true] %s27_s30  ;;  %s59_s14 = int_to_ptr.vmem [resolvable:$true] %s58_s14 }
  0x27   :  { %s779_s19 = scalar_lea.hbm %s1156_s0, 256 }
  0x28   :  { %p780_p2 = scmp.ne.s32.totalorder %s1156_s0, %s779_s19  ;;  %p783_p3 = scmp.lt.u32.totalorder %s779_s19, %s1156_s0 }
  0x2a   :  { %p785_p4 = pnand %p783_p3, %p780_p2 }
  0x2c   :  { %788 = shalt.err (!%p785_p4)
}
  0x2d   :  { %s789_s6 = scalar_lea.vmem %s28_s30, 256  ;;  %p794_p6 = scmp.lt.s32.totalorder %s28_s30, %s28_s30 }
  0x2e   :  { %p790_p5 = scmp.ne.s32.totalorder %s28_s30, %s789_s6  ;;  %p795_p7 = scmp.lt.s32.totalorder %s789_s6, %s789_s6 }
  0x30   :  { %p796_p8 = por %p795_p7, %p794_p6 }
  0x32   :  { %p797_p9 = pnand %p796_p8, %p790_p5 }
  0x34   :  { %800 = shalt.err (!%p797_p9)
}
  0x35   :  { %33 = dma.hbm_to_vmem [thread:$0]  %s1156_s0, 256, %s28_s30, [#allocation3], %s901_s15, %s901_s15, %s902_s16  }
  0x36   :  { %s801_s1 = scalar_lea.hbm %s1161_s5, 16 }
  0x37   :  { %p802_p10 = scmp.ne.s32.totalorder %s1161_s5, %s801_s1  ;;  %p805_p11 = scmp.lt.u32.totalorder %s801_s1, %s1161_s5 }
  0x39   :  { %p807_p12 = pnand %p805_p11, %p802_p10 }
  0x3b   :  { %810 = shalt.err (!%p807_p12)
}
  0x3c   :  { %s811_s18 = scalar_lea.vmem %s59_s14, 16  ;;  %s815_s19 = scalar_lea.vmem %s59_s14, 32 }
  0x3d   :  { %p812_p13 = scmp.ne.s32.totalorder %s59_s14, %s811_s18  ;;  %p816_p0 = scmp.lt.s32.totalorder %s59_s14, %s59_s14 }
  0x3e   :  { %p817_p1 = scmp.lt.s32.totalorder %s815_s19, %s811_s18 }
  0x40   :  { %p818_p2 = por %p817_p1, %p816_p0 }
  0x42   :  { %p819_p3 = pnand %p818_p2, %p812_p13 }
  0x44   :  { %822 = shalt.err (!%p819_p3)
}
  0x45   :  { %61 = dma.hbm_to_vmem [thread:$0]  %s1161_s5, 16, %s59_s14, [#allocation6]  }
  0x46   :  { %s905_s20 = smov [#allocation10]   ;;  %s906_s23 = smov [#allocation11]  }
  0x47   :  { %s80_s21 = sshll.u32 %s905_s20, 4  ;;  %s93_s25 = sshll.u32 %s906_s23, 4  ;;  %s81_s21 = int_to_ptr.vmem [resolvable:$true] %s80_s21  ;;  %s1039_s25 = int_to_ptr.vmem [resolvable:$true] %s93_s25 }
  0x48   :  { %s823_s26 = scalar_lea.hbm %s1163_s7, 16 }
  0x49   :  { %p824_p4 = scmp.ne.s32.totalorder %s1163_s7, %s823_s26  ;;  %p827_p5 = scmp.lt.u32.totalorder %s823_s26, %s1163_s7 }
  0x4b   :  { %p829_p6 = pnand %p827_p5, %p824_p4 }
  0x4d   :  { %832 = shalt.err (!%p829_p6)
}
  0x4e   :  { %s833_s5 = scalar_lea.vmem %s81_s21, 16  ;;  %s837_s14 = scalar_lea.vmem %s81_s21, 32 }
  0x4f   :  { %p834_p7 = scmp.ne.s32.totalorder %s81_s21, %s833_s5  ;;  %p838_p8 = scmp.lt.s32.totalorder %s81_s21, %s81_s21 }
  0x50   :  { %p839_p9 = scmp.lt.s32.totalorder %s837_s14, %s833_s5 }
  0x52   :  { %p840_p10 = por %p839_p9, %p838_p8 }
  0x54   :  { %p841_p11 = pnand %p840_p10, %p834_p7 }
  0x56   :  { %844 = shalt.err (!%p841_p11)
}
  0x57   :  { %83 = dma.hbm_to_vmem [thread:$0]  %s1163_s7, 16, %s81_s21, [#allocation9]  }
  0x58   :  { %s845_s19 = scalar_lea.hbm %s1166_s10, 512 }
  0x59   :  { %p846_p12 = scmp.ne.s32.totalorder %s1166_s10, %s845_s19  ;;  %p849_p13 = scmp.lt.u32.totalorder %s845_s19, %s1166_s10 }
  0x5b   :  { %p851_p0 = pnand %p849_p13, %p846_p12 }
  0x5d   :  { %854 = shalt.err (!%p851_p0)
}
  0x5e   :  { %s855_s6 = scalar_lea.vmem %s1039_s25, 512  ;;  %p860_p2 = scmp.lt.s32.totalorder %s1039_s25, %s1039_s25 }
  0x5f   :  { %p856_p1 = scmp.ne.s32.totalorder %s1039_s25, %s855_s6  ;;  %p861_p3 = scmp.lt.s32.totalorder %s855_s6, %s855_s6 }
  0x61   :  { %p862_p4 = por %p861_p3, %p860_p2 }
  0x63   :  { %p863_p5 = pnand %p862_p4, %p856_p1 }
  0x65   :  { %866 = shalt.err (!%p863_p5)
}
  0x66   :  { %99 = dma.hbm_to_vmem [thread:$0]  %s1166_s10, 512, %s1039_s25, [#allocation12], %s901_s15, %s901_s15, %s902_s16  }
  0x67   :  { %889 = dma.done.wait [#allocation3], 256  }
  0x68   :  { %890 = vsyncadd [#allocation3], 4294967040 }
  0x69   :  { %891 = dma.done.wait [#allocation6], 272  }
  0x6a   :  { %892 = vsyncadd [#allocation6], 4294967024 }
  0x6b   :  { %893 = dma.done.wait [#allocation9], 528  }
  0x6c   :  { %894 = vsyncadd [#allocation9], 4294966768 }
  0x6d   :  { %895 = dma.done.wait [#allocation12], 512  }
  0x6e   :  { %896 = vsyncadd [#allocation12], 4294966784  ;;  %v907_v0 = vmov 0   ;;  %vm135_vm0 = vcmask 261120   ;;  %v124_v1 = vld [vmem:[%s1160_s4] sm:$0xff]  ;;  %v125_v2 = vld [vmem:[%s1160_s4 + $0x8] sm:$0xff] }
  0x6f   :  { %717 = vset.pattern.permute.xlu0 %v907_v0  ;;  %718 = vset.pattern.permute.xlu1 %v907_v0  ;;  %v126_v3 = vld [vmem:[%s1160_s4 + $0x10] sm:$0xff]  ;;  %v674_v4 = vpack.c.bf16 %v125_v2, %v124_v1  ;;  %v127_v5 = vld [vmem:[%s1160_s4 + $0x18] sm:$0xff]  ;;  %v1085_v6 = vld [vmem:[#allocation2] sm:$0xff]  ;;  %s909_s26 = smov [#allocation13]   ;;  %vm567_vm5 = vcmask 523520  }
  0x70   :  { %v678_v7 = vpack.c.bf16 %v127_v5, %v126_v3  ;;  %638 = vmatprep.mubr.msk.f32.mxu0 %vm135_vm0, %v1085_v6  ;;  %v343_v8 = vld [vmem:[%s1164_s8] sm:$0xff]  ;;  %v344_v9 = vld [vmem:[%s1164_s8 + $0x8] sm:$0xff]  ;;  %v345_v13 = vld [vmem:[%s1164_s8 + $0x10] sm:$0xff]  ;;  %s575_s27 = sshll.u32 %s909_s26, 4  ;;  %s576_s27 = int_to_ptr.vmem [resolvable:$true] %s575_s27 }
  0x71   :  { %675 = vmatprep.subr.bf16.mxu0 %v674_v4  ;;  %v219_v10 = vld [vmem:[%s1158_s2] sm:$0xff]  ;;  %v690_v12 = vpack.c.bf16 %v344_v9, %v343_v8  ;;  %v346_v14 = vld [vmem:[%s1164_s8 + $0x18] sm:$0xff]  ;;  %v220_v15 = vld [vmem:[%s1158_s2 + $0x8] sm:$0xff]  ;;  %s867_s28 = scalar_lea.vmem %s576_s27, 256  ;;  %p872_p7 = scmp.lt.s32.totalorder %s576_s27, %s576_s27 }
  0x72   :  { %677 = vmatpush3.bf16.msra.mxu0 %v674_v4  ;;  %v437_v11 = vld [vmem:[%s1159_s3] sm:$0xff]  ;;  %223 = vperm.xlu0 %717, %v219_v10   ;;  %v438_v16 = vld [vmem:[%s1159_s3 + $0x8] sm:$0xff]  ;;  %v694_v18 = vpack.c.bf16 %v346_v14, %v345_v13  ;;  %v1115_v19 = vld [vmem:[#allocation5] sm:$0xff]  ;;  %p868_p6 = scmp.ne.s32.totalorder %s576_s27, %s867_s28  ;;  %p873_p8 = scmp.lt.s32.totalorder %s867_s28, %s867_s28 }
  0x73   :  { %679 = vmatprep.subr.bf16.mxu0 %v678_v7  ;;  %441 = vperm.xlu1 %718, %v437_v11   ;;  %v1113_v17 = vld [vmem:[#allocation2 + $0x8] sm:$0xff]  ;;  %v1121_v20 = vld [vmem:[#allocation5 + $0x8] sm:$0xff]  ;;  %v590_v31 = vld [vmem:[#allocation7] ss:$0 sm:$0xff] }
  0x74   :  { %v235_v21 = vld [vmem:[#allocation8] sm:$0xff]  ;;  %v236_v22 = vld [vmem:[#allocation8 + $0x8] sm:$0xff]  ;;  %v237_v24 = vld [vmem:[#allocation8 + $0x10] sm:$0xff]  ;;  %p874_p9 = por %p873_p8, %p872_p7 }
  0x75   :  { %v682_v23 = vpack.c.bf16 %v236_v22, %v235_v21  ;;  %v238_v25 = vld [vmem:[#allocation8 + $0x18] sm:$0xff]  ;;  %v453_v27 = vld [vmem:[#allocation11] sm:$0xff]  ;;  %v454_v28 = vld [vmem:[#allocation11 + $0x8] sm:$0xff] }
  0x76   :  { %681 = vmatpush3.bf16.msra.mxu0 %v678_v7  ;;  %228 = vperm.xlu0 %717, %v220_v15   ;;  %v686_v26 = vpack.c.bf16 %v238_v25, %v237_v24  ;;  %v698_v29 = vpack.c.bf16 %v454_v28, %v453_v27  ;;  %v455_v38 = vld [vmem:[#allocation11 + $0x10] sm:$0xff]  ;;  %v456_v39 = vld [vmem:[#allocation11 + $0x18] sm:$0xff]  ;;  %p875_p10 = pnand %p874_p9, %p868_p6 }
  0x77   :  { %691 = vmatprep.subr.bf16.mxu0 %v690_v12  ;;  %446 = vperm.xlu1 %718, %v438_v16   ;;  %v598_v43 = vld [vmem:[%s1165_s9] ss:$0 sm:$0xff]  ;;  %v702_v44 = vpack.c.bf16 %v456_v39, %v455_v38  ;;  %v593_v55 = vld [vmem:[#allocation10] ss:$0 sm:$0xff] }
  0x78   :  { %683 = vmatprep.subr.bf16.mxu1 %v682_v23  ;;  %v601_v62 = vld [vmem:[%s1167_s11] ss:$0 sm:$0xff]  ;;  %s908_s11 = smov 32  }
  0x79   :  { %639 = vmatmul.mubr.msk.f32.vlgmr.msra.gmra.mrb[0].mxu0 %vm135_vm0, %v1113_v17  ;;  %685 = vmatpush3.bf16.msra.mxu1 %v682_v23 }
  0x7a   :  { %693 = vmatpush3.bf16.msra.mxu0 %v690_v12  ;;  %660 = vmatprep.mubr.msk.f32.mxu0 %vm135_vm0, %v1115_v19 }
  0x7b   :  { %695 = vmatprep.subr.bf16.mxu0 %v694_v18  ;;  %687 = vmatprep.subr.bf16.mxu1 %v686_v26 }
  0x7d   :  { %689 = vmatpush3.bf16.msra.mxu1 %v686_v26 }
  0x7e   :  { %697 = vmatpush3.bf16.msra.mxu0 %v694_v18  ;;  %699 = vmatprep.subr.bf16.mxu1 %v698_v29 }
  0x81   :  { %661 = vmatmul.mubr.msk.f32.vlgmr.msra.gmra.mrb[2].mxu0 %vm135_vm0, %v1121_v20 }
  0xf1   :  { %v224_v30 = vpop.permute.xlu0 %223 }
  0xf2   :  { %v442_v40 = vpop.permute.xlu1 %441 }
  0xf5   :  { %v229_v33 = vpop.permute.xlu0 %228 }
  0xf6   :  { %v447_v49 = vpop.permute.xlu1 %446 }
 0x14c   :  { %v640_v32 = vpop.f32.mrb[0].mxu0 }
 0x14d   :  { %v214_v34 = vadd.f32 %v640_v32, %v590_v31  ;;  %v208_v35 = vpop.f32.mrb[1].mxu0 }
 0x14e   :  { %v209_v36 = vadd.f32 %v590_v31, %v208_v35 }
 0x14f   :  { %v232_v37 = vmul.f32 %v229_v33, %v214_v34  ;;  %vm218_vm1 = vcmp.gt.f32.partialorder %v214_v34, 0.0 }
 0x150   :  { %vm217_vm2 = vcmp.gt.f32.partialorder %v209_v36, 0.0  ;;  %v231_v41 = vmul.f32 %v224_v30, %v209_v36 }
 0x151   :  { %v234_v45 = vsel %vm218_vm1, %v214_v34, %v232_v37 }
 0x152   :  { %v233_v42 = vsel %vm217_vm2, %v209_v36, %v231_v41 }
 0x153   :  { %649 = vmatprep.mubr.msk.f32.mxu1 %vm135_vm0, %v233_v42 }
 0x154   :  { %650 = vmatmul.mubr.msk.f32.vlgmr.msra.gmra.mrb[0].mxu1 %vm135_vm0, %v234_v45  ;;  %v662_v46 = vpop.f32.mrb[2].mxu0 }
 0x155   :  { %v432_v47 = vadd.f32 %v662_v46, %v598_v43  ;;  %v426_v48 = vpop.f32.mrb[3].mxu0  ;;  %701 = vmatpush3.bf16.msra.mxu1 %v698_v29 }
 0x156   :  { %v427_v50 = vadd.f32 %v598_v43, %v426_v48  ;;  %703 = vmatprep.subr.bf16.mxu1 %v702_v44 }
 0x157   :  { %v450_v51 = vmul.f32 %v447_v49, %v432_v47  ;;  %vm436_vm3 = vcmp.gt.f32.partialorder %v432_v47, 0.0 }
 0x158   :  { %vm435_vm4 = vcmp.gt.f32.partialorder %v427_v50, 0.0  ;;  %v449_v52 = vmul.f32 %v442_v40, %v427_v50 }
 0x159   :  { %705 = vmatpush3.bf16.msra.mxu1 %v702_v44  ;;  %v452_v54 = vsel %vm436_vm3, %v432_v47, %v450_v51 }
 0x15a   :  { %v451_v53 = vsel %vm435_vm4, %v427_v50, %v449_v52 }
 0x15b   :  { %671 = vmatprep.mubr.msk.f32.mxu1 %vm135_vm0, %v451_v53 }
 0x15c   :  { %672 = vmatmul.mubr.msk.f32.vlgmr.msra.gmra.mrb[2].mxu1 %vm135_vm0, %v452_v54 }
 0x227   :  { %v651_v56 = vpop.f32.mrb[0].mxu1 }
 0x228   :  { %v324_v57 = vadd.f32 %v651_v56, %v593_v55  ;;  %v318_v58 = vpop.f32.mrb[1].mxu1 }
 0x229   :  { %v319_v59 = vadd.f32 %v593_v55, %v318_v58 }
 0x22a   :  { %v597_v60 = vmul.f32 -1.442695, %v324_v57 }
 0x22b   :  { %v596_v61 = vmul.f32 -1.442695, %v319_v59 }
 0x22c   :  { %719 = vpow2.f32 %v597_v60 }
 0x22d   :  { %721 = vpow2.f32 %v596_v61 }
 0x22f   :  { %v673_v63 = vpop.f32.mrb[2].mxu1 }
 0x230   :  { %v542_v0 = vadd.f32 %v673_v63, %v601_v62  ;;  %v536_v1 = vpop.f32.mrb[3].mxu1 }
 0x231   :  { %v537_v2 = vadd.f32 %v601_v62, %v536_v1 }
 0x232   :  { %v605_v3 = vmul.f32 -1.442695, %v542_v0 }
 0x233   :  { %v604_v4 = vmul.f32 -1.442695, %v537_v2 }
 0x234   :  { %723 = vpow2.f32 %v605_v3 }
 0x235   :  { %725 = vpow2.f32 %v604_v4 }
 0x236   :  { %v720_v5 = vpop.eup %719 }
 0x237   :  { %v722_v7 = vpop.eup %721  ;;  %v334_v8 = vadd.f32 1.0, %v720_v5 }
 0x238   :  { %v333_v9 = vadd.f32 1.0, %v722_v7 }
 0x239   :  { %727 = vrcp.f32 %v334_v8 }
 0x23a   :  { %729 = vrcp.f32 %v333_v9 }
 0x23e   :  { %v724_v10 = vpop.eup %723 }
 0x23f   :  { %v726_v11 = vpop.eup %725  ;;  %v552_v12 = vadd.f32 1.0, %v724_v10 }
 0x240   :  { %v551_v13 = vadd.f32 1.0, %v726_v11 }
 0x241   :  { %731 = vrcp.f32 %v552_v12 }
 0x242   :  { %733 = vrcp.f32 %v551_v13 }
 0x243   :  { %v728_v14 = vpop.eup %727 }
 0x244   :  { %v730_v15 = vpop.eup %729  ;;  %v340_v16 = vmul.f32 %v728_v14, %v1121_v20 }
 0x245   :  { %v339_v18 = vmul.f32 %v730_v15, %v1115_v19 }
 0x246   :  { %342 = vst.msk [vmem:[#allocation13 + $0x8] sm:$0xff] %vm135_vm0, %v340_v16 }
 0x247   :  { %341 = vst.msk [vmem:[#allocation13] sm:$0xff] %vm135_vm0, %v339_v18 }
 0x24b   :  { %v732_v21 = vpop.eup %731 }
 0x24c   :  { %v734_v22 = vpop.eup %733  ;;  %v558_v23 = vmul.f32 %v732_v21, %v1113_v17 }
 0x24d   :  { %v557_v24 = vmul.f32 %v734_v22, %v1085_v6 }
 0x24e   :  { %563 = vrot.lane.b32.xlu1 %v558_v23, %s908_s11 }
 0x24f   :  { %561 = vrot.lane.b32.xlu0 %v557_v24, %s908_s11 }
 0x2c0   :  { %v564_v25 = vpop.permute.xlu1 %563 }
 0x2c1   :  { %v562_v20 = vpop.permute.xlu0 %561  ;;  %569 = vst.msk [vmem:[#allocation13 + $0x8] sm:$0xff] %vm567_vm5, %v564_v25 }
 0x2c2   :  { %568 = vst.msk [vmem:[#allocation13] sm:$0xff] %vm567_vm5, %v562_v20 }
 0x2c3   :  { %878 = shalt.err (!%p875_p10)
}
 0x2c4   :  { %s879_s1 = scalar_lea.hbm %s1168_s12, 256 }
 0x2c5   :  { %p880_p11 = scmp.ne.s32.totalorder %s1168_s12, %s879_s1  ;;  %p883_p12 = scmp.lt.u32.totalorder %s879_s1, %s1168_s12 }
 0x2c7   :  { %p885_p13 = pnand %p883_p12, %p880_p11 }
 0x2c9   :  { %888 = shalt.err (!%p885_p13)
}
 0x2ca   :  { %581 = dma.vmem_to_hbm [thread:$0]  %s576_s27, 256, %s1168_s12, [#allocation4], %s901_s15, %s901_s15, %s902_s16  }
 0x2cb   :  { %897 = dma.done.wait [#allocation4], 256  }
 0x2cc   :  { %898 = vsyncadd [#allocation4], 4294967040 }
 0x2cd   :  { %585 = vsyncpa [#allocation3], 1 }
 0x2ce   :  { %586 = vsyncpa [#allocation6], 1 }
 0x2cf   :  { %587 = vsyncpa [#allocation9], 1 }
 0x2d0   :  { %588 = vsyncpa [#allocation12], 1 }
 0x2d1   :  { %589 = vsyncpa [#allocation4], 1 }

</bundles_post_ra>
